<compile_context>
chip_gen: v6e
topology: v6e:2x2x1
jax: 0.10.0
libtpu: 0.0.40
codegen_flags: <defaults>
</compile_context>

<pallas_src>
import functools

import jax
import jax.numpy as jnp
from jax.experimental import pallas as pl
from jax.experimental.pallas import tpu as pltpu


def _pick_tile(dim, cap, align=8):
    """Largest tile <= cap that divides dim (aligned to `align`), else full dim."""
    if dim <= cap:
        return dim
    for cand in range(cap - cap % align, 0, -align):
        if dim % cand == 0:
            return cand
    return dim  # no aligned divisor: full dim (grid=1 along this axis; perf cliff)


def _vmem_capacity_bytes():
    """Per-core VMEM capacity; conservative fallback (v7x) if the query fails."""
    try:
        return int(pltpu.get_tpu_info().vmem_capacity_bytes)
    except Exception:
        return 64 << 20


# --------------------------------------------------------------------------
# Path A: h2 resident in VMEM, 1-D grid over N, in-kernel online LSE over M.
# --------------------------------------------------------------------------
def _cl_kernel_resident(h1_ref, h2_ref, lse_ref, sq_ref, cs_ref, *,
                        scale, tm, num_m_tiles, mxu_dtype):
    h1f = h1_ref[...].astype(jnp.float32)                 # (TN, K)
    tn = h1f.shape[0]

    # Regularizer partials use the UNSCALED h1.
    cs_ref[...] = jnp.sum(h1f, axis=0, keepdims=True).reshape(1, 1, -1)   # (1,1,K)
    sq_ref[...] = jnp.sum(h1f * h1f, keepdims=True).reshape(1, 1, 1)      # (1,1,1)

    # Fold 1/(bit*0.3) into the small (TN, K) operand; cast for the MXU.
    h1s = (h1f * scale).astype(mxu_dtype)

    def body(mt, carry):
        m_i, l_i = carry
        if isinstance(mt, int):                           # static unroll path
            start = mt * tm
        else:                                             # fori_loop path
            start = pl.multiple_of(mt * tm, tm)
        h2_t = h2_ref[pl.ds(start, tm), :]                # (TM, K), mxu dtype
        # Contract over the last dim of BOTH operands -> no h2 transpose.
        s = jax.lax.dot_general(
            h1s, h2_t,
            dimension_numbers=(((1,), (1,)), ((), ())),
            preferred_element_type=jnp.float32)           # (TN, TM)
        m_new = jnp.maximum(m_i, jnp.max(s, axis=1, keepdims=True))
        l_i = l_i * jnp.exp(m_i - m_new) + jnp.sum(jnp.exp(s - m_new),
                                                   axis=1, keepdims=True)
        return m_new, l_i

    carry = (jnp.full((tn, 1), -jnp.inf, jnp.float32),
             jnp.zeros((tn, 1), jnp.float32))
    if num_m_tiles <= 4:                                  # small static unroll only
        for mt in range(num_m_tiles):
            carry = body(mt, carry)
    else:
        carry = jax.lax.fori_loop(0, num_m_tiles, body, carry)
    m_i, l_i = carry

    lse = m_i + jnp.log(l_i)                              # (TN, 1)
    lse_ref[...] = jnp.sum(lse, keepdims=True).reshape(1, 1, 1)


# --------------------------------------------------------------------------
# Path B: 2-D grid (N parallel, M arbitrary); h2 M-tiles auto-pipelined and the
# online-LSE state carried in VMEM scratch.  Used when h2 cannot stay resident.
# --------------------------------------------------------------------------
def _cl_kernel_tiled(h1_ref, h2_ref, lse_ref, sq_ref, cs_ref, m_sc, l_sc, *,
                     scale, mxu_dtype):
    j = pl.program_id(1)

    @pl.when(j == 0)
    def _():
        m_sc[...] = jnp.full_like(m_sc, -jnp.inf)
        l_sc[...] = jnp.zeros_like(l_sc)

    h1f = h1_ref[...].astype(jnp.float32)                 # (TN, K)
    h1s = (h1f * scale).astype(mxu_dtype)
    s = jax.lax.dot_general(
        h1s, h2_ref[...],
        dimension_numbers=(((1,), (1,)), ((), ())),
        preferred_element_type=jnp.float32)               # (TN, TM)
    m_new = jnp.maximum(m_sc[...], jnp.max(s, axis=1, keepdims=True))
    l_sc[...] = l_sc[...] * jnp.exp(m_sc[...] - m_new) + jnp.sum(
        jnp.exp(s - m_new), axis=1, keepdims=True)
    m_sc[...] = m_new

    @pl.when(j == pl.num_programs(1) - 1)
    def _():
        cs_ref[...] = jnp.sum(h1f, axis=0, keepdims=True).reshape(1, 1, -1)
        sq_ref[...] = jnp.sum(h1f * h1f, keepdims=True).reshape(1, 1, 1)
        lse_ref[...] = jnp.sum(m_sc[...] + jnp.log(l_sc[...]),
                               keepdims=True).reshape(1, 1, 1)


# --------------------------------------------------------------------------
# Wrapper
# --------------------------------------------------------------------------
def cl_loss(h1, h2, weighted, labels, bit, *, matmul_dtype=None, force_path=None):
    """Pallas implementation of CL.forward (scalar loss).

    matmul_dtype: dtype used for the MXU operands (e.g. jnp.bfloat16 for a large
      speedup, especially on v5e).  Default: input dtype (bit-accurate).
    force_path: None (auto) | "resident" | "tiled" — mostly for testing.
    """
    n, k = h1.shape
    m, k2 = h2.shape
    assert k == k2, "feature dims of h1/h2 must match"
    scale = 1.0 / (float(bit) * 0.3)
    mxu_dtype = jnp.dtype(matmul_dtype) if matmul_dtype is not None else jnp.dtype(h1.dtype)

    # ---- target ("picked") logit, computed outside the kernel ----
    # TODO(synk): out-of-range targets (>= M) are clamped by the gather instead
    # of raising like torch.nn.CrossEntropyLoss.
    tgt = jnp.where(labels == 0, jnp.zeros_like(weighted), weighted).astype(jnp.int32)
    h2_tgt = jnp.take(h2, tgt, axis=0).astype(jnp.float32)                 # (N, K)
    picked = jnp.einsum("nk,nk->n", h1.astype(jnp.float32), h2_tgt,
                        precision="highest") * scale                       # (N,)

    # Cast h2 once for the MXU (also halves its resident VMEM when bf16).
    h2_mxu = h2.astype(mxu_dtype)
    itemsize = jnp.dtype(mxu_dtype).itemsize

    # ---- tiling over N: big tiles amortize per-step overhead, but keep
    #      grid_n >= 2 so both v7x TensorCores get work. ----
    cap_n = 512
    if n >= 16:
        cap_n = min(cap_n, max(8, (n // 2) // 8 * 8))
    tn = _pick_tile(n, cap_n)
    grid_n = n // tn

    vmem_cap = _vmem_capacity_bytes()
    out_bytes = 2 * (4 + 4 + 4 * k)

    # Resident-h2 footprint estimate (h2 single-buffered).
    tm_res = _pick_tile(m, 256)
    need_resident = (m * k * itemsize                       # h2 (single buffer)
                     + 2 * tn * k * h1.dtype.itemsize       # h1 tiles (double buffer)
                     + 6 * tn * tm_res * 4                  # logits + softmax temps
                     + out_bytes)
    use_resident = need_resident <= min(vmem_cap, 128 << 20) - (24 << 20)
    if force_path is not None:
        use_resident = (force_path == "resident")

    out_shape = (
        jax.ShapeDtypeStruct((grid_n, 1, 1), jnp.float32),   # sum(lse) partials
        jax.ShapeDtypeStruct((grid_n, 1, 1), jnp.float32),   # sum(h1^2) partials
        jax.ShapeDtypeStruct((grid_n, 1, k), jnp.float32),   # column sums of h1
    )

    if use_resident:
        tm = tm_res
        num_m_tiles = m // tm
        kernel = functools.partial(_cl_kernel_resident, scale=scale, tm=tm,
                                   num_m_tiles=num_m_tiles, mxu_dtype=mxu_dtype)
        vmem_limit = int(min(need_resident + (16 << 20), vmem_cap))

        def run_resident(single_buffer):
            if single_buffer:
                # Constant index_map -> never re-DMA'd; single-buffer it so the
                # default pipelining does not allocate 2x m*k of VMEM.
                h2_spec = pl.BlockSpec((m, k), lambda i: (0, 0),
                                       pipeline_mode=pl.Buffered(1))
            else:
                h2_spec = pl.BlockSpec((m, k), lambda i: (0, 0))
            return pl.pallas_call(
                kernel,
                grid=(grid_n,),
                out_shape=out_shape,
                in_specs=[
                    pl.BlockSpec((tn, k), lambda i: (i, 0)),   # h1 tiles (pipelined)
                    h2_spec,                                   # h2 resident in VMEM
                ],
                out_specs=(
                    pl.BlockSpec((1, 1, 1), lambda i: (i, 0, 0)),
                    pl.BlockSpec((1, 1, 1), lambda i: (i, 0, 0)),
                    pl.BlockSpec((1, 1, k), lambda i: (i, 0, 0)),
                ),
                compiler_params=pltpu.CompilerParams(
                    dimension_semantics=("parallel",),
                    vmem_limit_bytes=vmem_limit,
                ),
            )(h1, h2_mxu)

        try:
            lse_p, sq_p, cs_p = run_resident(True)
        except Exception:
            # Feature-detect fallback if pipeline_mode=Buffered(1) is unsupported.
            lse_p, sq_p, cs_p = run_resident(False)
    else:
        tm = _pick_tile(m, 512)
        grid_m = m // tm
        need_tiled = (2 * tm * k * itemsize                  # h2 M-tiles (double buffer)
                      + 2 * tn * k * h1.dtype.itemsize       # h1 tiles
                      + 6 * tn * tm * 4                      # logits + softmax temps
                      + 2 * tn * 128 * 4                     # LSE scratch (padded)
                      + out_bytes)
        kernel = functools.partial(_cl_kernel_tiled, scale=scale, mxu_dtype=mxu_dtype)
        lse_p, sq_p, cs_p = pl.pallas_call(
            kernel,
            grid=(grid_n, grid_m),
            out_shape=out_shape,
            in_specs=[
                pl.BlockSpec((tn, k), lambda i, j: (i, 0)),   # h1: constant over j
                pl.BlockSpec((tm, k), lambda i, j: (j, 0)),   # h2: M tiles
            ],
            out_specs=(
                pl.BlockSpec((1, 1, 1), lambda i, j: (i, 0, 0)),
                pl.BlockSpec((1, 1, 1), lambda i, j: (i, 0, 0)),
                pl.BlockSpec((1, 1, k), lambda i, j: (i, 0, 0)),
            ),
            scratch_shapes=[pltpu.VMEM((tn, 1), jnp.float32),   # m_i
                            pltpu.VMEM((tn, 1), jnp.float32)],  # l_i
            compiler_params=pltpu.CompilerParams(
                dimension_semantics=("parallel", "arbitrary"),
                vmem_limit_bytes=int(min(need_tiled + (16 << 20), vmem_cap)),
            ),
        )(h1, h2_mxu)

    # Tiny finalize (fused by XLA): CE mean + regularizer.
    ce = (jnp.sum(lse_p) - jnp.sum(picked)) / n
    colsum = jnp.sum(cs_p[:, 0, :], axis=0)                   # (K,)
    bal = colsum / n
    reg = jnp.mean(bal * bal) - jnp.sum(sq_p) / (n * k)
    return ce + reg


def cl_loss_ref(h1, h2, weighted, labels, bit):
    """Plain-JAX reference for validation."""
    logits = jnp.einsum("ik,jk->ij", h1, h2, precision="highest") / bit / 0.3
    bal = jnp.sum(h1, axis=0) / h1.shape[0]
    reg = jnp.mean(bal ** 2) - jnp.mean(h1 ** 2)
    w = jnp.where(labels == 0, jnp.zeros_like(weighted), weighted).astype(jnp.int32)
    lse = jax.scipy.special.logsumexp(logits, axis=1)
    picked = jnp.take_along_axis(logits, w[:, None], axis=1)[:, 0]
    ce = jnp.mean(lse - picked)
    return ce + reg


if __name__ == "__main__":
    key = jax.random.PRNGKey(0)

    # --- small test (matches the module's toy usage) ---
    k1, k2, k3, k4 = jax.random.split(key, 4)
    N, K = 8, 32
    BIT = K
    h1 = jax.random.normal(k1, (N, K), dtype=jnp.float32)
    h2 = jax.random.normal(k2, (N, K), dtype=jnp.float32)
    weighted = jax.random.randint(k3, (N,), 0, N).astype(jnp.float32)
    labels = jax.random.randint(k4, (N,), 0, 2).astype(jnp.int32)

    loss = jax.block_until_ready(cl_loss(h1, h2, weighted, labels, BIT))
    ref = cl_loss_ref(h1, h2, weighted, labels, BIT)
    assert jnp.allclose(loss, ref, atol=1e-5, rtol=1e-5), (loss, ref)

    # --- moderate test: N grid (>= 2 steps), resident h2, inner M tiling ---
    k5, k6, k7, k8 = jax.random.split(jax.random.PRNGKey(1), 4)
    N2, K2, M2 = 512, 128, 1024
    BIT2 = K2
    h1b = jax.random.normal(k5, (N2, K2), dtype=jnp.float32)
    h2b = jax.random.normal(k6, (M2, K2), dtype=jnp.float32)
    weightedb = jax.random.randint(k7, (N2,), 0, M2).astype(jnp.float32)
    labelsb = jax.random.randint(k8, (N2,), 0, 2).astype(jnp.int32)
    refb = cl_loss_ref(h1b, h2b, weightedb, labelsb, BIT2)

    lossb = jax.block_until_ready(cl_loss(h1b, h2b, weightedb, labelsb, BIT2))
    assert jnp.allclose(lossb, refb, atol=1e-4, rtol=1e-4), (lossb, refb)

    # --- same shapes through the 2-D-grid (M "arbitrary") path ---
    lossc = jax.block_until_ready(
        cl_loss(h1b, h2b, weightedb, labelsb, BIT2, force_path="tiled"))
    assert jnp.allclose(lossc, refb, atol=1e-4, rtol=1e-4), (lossc, refb)

    # --- bf16 MXU operands (speed path), looser tolerance ---
    lossd = jax.block_until_ready(
        cl_loss(h1b, h2b, weightedb, labelsb, BIT2, matmul_dtype=jnp.bfloat16))
    assert jnp.allclose(lossd, refb, atol=1e-2, rtol=1e-2), (lossd, refb)

    print("KERNEL_OK")
</pallas_src>

<mosaic_0001>
module attributes {stable_mosaic.version = 11 : i64} {
  func.func @_cl_kernel_resident(%arg0: i32, %arg1: memref<8x32xf32, #tpu.memory_space<vmem>>, %arg2: memref<8x32xf32, #tpu.memory_space<vmem>>, %arg3: memref<1x1x1xf32, #tpu.memory_space<vmem>>, %arg4: memref<1x1x1xf32, #tpu.memory_space<vmem>>, %arg5: memref<1x1x32xf32, #tpu.memory_space<vmem>>) attributes {dimension_semantics = [#tpu.dimension_semantics<parallel>], iteration_bounds = array<i64: 1>, scalar_prefetch = 0 : i64, scratch_operands = 0 : i64, tpu.core_type = #tpu.core_type<tc>, window_params = [{transform_indices = @transform_0, window_bounds = array<i64: 8, 32>}, {pipeline_mode = #tpu.pipeline_mode<synchronous>, transform_indices = @transform_1, window_bounds = array<i64: 8, 32>}, {transform_indices = @transform_2, window_bounds = array<i64: 1, 1, 1>}, {transform_indices = @transform_3, window_bounds = array<i64: 1, 1, 1>}, {transform_indices = @transform_4, window_bounds = array<i64: 1, 1, 32>}]} {
    %c0 = arith.constant 0 : index
    %c0_0 = arith.constant 0 : index
    %0 = vector.load %arg1[%c0, %c0_0] : memref<8x32xf32, #tpu.memory_space<vmem>>, vector<8x32xf32>
    %cst = arith.constant dense<0.000000e+00> : vector<32xf32>
    %1 = vector.multi_reduction <add>, %0, %cst [0] : vector<8x32xf32> to vector<32xf32>
    %2 = vector.shape_cast %1 : vector<32xf32> to vector<1x32xf32>
    %3 = vector.shape_cast %2 : vector<1x32xf32> to vector<1x1x32xf32>
    %c0_1 = arith.constant 0 : index
    %c0_2 = arith.constant 0 : index
    %c0_3 = arith.constant 0 : index
    %4 = vector.load %arg5[%c0_1, %c0_2, %c0_3] : memref<1x1x32xf32, #tpu.memory_space<vmem>>, vector<1x1x32xf32>
    tpu.vector_store %arg5[%c0_1, %c0_2, %c0_3], %3 {strides = array<i32>} : memref<1x1x32xf32, #tpu.memory_space<vmem>>, vector<1x1x32xf32>,
    %5 = arith.mulf %0, %0 : vector<8x32xf32>
    %6 = vector.shape_cast %5 : vector<8x32xf32> to vector<1x8x32xf32>
    %cst_4 = arith.constant dense<0.000000e+00> : vector<1xf32>
    %7 = vector.multi_reduction <add>, %6, %cst_4 [1, 2] : vector<1x8x32xf32> to vector<1xf32>
    %8 = vector.shape_cast %7 : vector<1xf32> to vector<1x1x1xf32>
    %9 = vector.extract %8[0, 0, 0] : f32 from vector<1x1x1xf32>
    %10 = vector.broadcast %9 : f32 to vector<1x1xf32>
    %11 = vector.shape_cast %10 : vector<1x1xf32> to vector<1x1x1xf32>
    %c0_5 = arith.constant 0 : index
    %c0_6 = arith.constant 0 : index
    %c0_7 = arith.constant 0 : index
    %12 = vector.load %arg4[%c0_5, %c0_6, %c0_7] : memref<1x1x1xf32, #tpu.memory_space<vmem>>, vector<1x1x1xf32>
    tpu.vector_store %arg4[%c0_5, %c0_6, %c0_7], %11 {strides = array<i32>} : memref<1x1x1xf32, #tpu.memory_space<vmem>>, vector<1x1x1xf32>,
    %cst_8 = arith.constant 0.104166664 : f32
    %13 = vector.broadcast %cst_8 : f32 to vector<8x32xf32>
    %14 = arith.mulf %0, %13 : vector<8x32xf32>
    %cst_9 = arith.constant 0xFF800000 : f32
    %15 = vector.broadcast %cst_9 : f32 to vector<8x1xf32>
    %cst_10 = arith.constant 0.000000e+00 : f32
    %16 = vector.broadcast %cst_10 : f32 to vector<8x1xf32>
    %c0_11 = arith.constant 0 : index
    %c0_12 = arith.constant 0 : index
    %17 = vector.load %arg2[%c0_11, %c0_12] : memref<8x32xf32, #tpu.memory_space<vmem>>, vector<8x32xf32>
    %cst_13 = arith.constant dense<0.000000e+00> : vector<8x8xf32>
    %18 = tpu.matmul %14, %17, %cst_13 {dimension_numbers = #tpu.dot_dimension_numbers<[1], [1], [0], [0], [0, 0, 1, 0], [], []>} : vector<8x32xf32>, vector<8x32xf32>, vector<8x8xf32> -> vector<8x8xf32>
    %cst_14 = arith.constant dense<0xFF800000> : vector<8xf32>
    %19 = vector.multi_reduction <maximumf>, %18, %cst_14 [1] : vector<8x8xf32> to vector<8xf32>
    %20 = vector.shape_cast %19 : vector<8xf32> to vector<8x1xf32>
    %21 = arith.maximumf %15, %20 : vector<8x1xf32>
    %22 = arith.subf %15, %21 : vector<8x1xf32>
    %23 = math.exp %22 : vector<8x1xf32>
    %24 = arith.mulf %16, %23 : vector<8x1xf32>
    %25 = vector.broadcast %21 : vector<8x1xf32> to vector<8x8xf32>
    %26 = arith.subf %18, %25 : vector<8x8xf32>
    %27 = math.exp %26 : vector<8x8xf32>
    %cst_15 = arith.constant dense<0.000000e+00> : vector<8xf32>
    %28 = vector.multi_reduction <add>, %27, %cst_15 [1] : vector<8x8xf32> to vector<8xf32>
    %29 = vector.shape_cast %28 : vector<8xf32> to vector<8x1xf32>
    %30 = arith.addf %24, %29 : vector<8x1xf32>
    %31 = math.log %30 : vector<8x1xf32>
    %32 = arith.addf %21, %31 : vector<8x1xf32>
    %33 = vector.shape_cast %32 : vector<8x1xf32> to vector<1x8x1xf32>
    %cst_16 = arith.constant dense<0.000000e+00> : vector<1xf32>
    %34 = vector.multi_reduction <add>, %33, %cst_16 [1, 2] : vector<1x8x1xf32> to vector<1xf32>
    %35 = vector.shape_cast %34 : vector<1xf32> to vector<1x1x1xf32>
    %36 = vector.extract %35[0, 0, 0] : f32 from vector<1x1x1xf32>
    %37 = vector.broadcast %36 : f32 to vector<1x1xf32>
    %38 = vector.shape_cast %37 : vector<1x1xf32> to vector<1x1x1xf32>
    %c0_17 = arith.constant 0 : index
    %c0_18 = arith.constant 0 : index
    %c0_19 = arith.constant 0 : index
    %39 = vector.load %arg3[%c0_17, %c0_18, %c0_19] : memref<1x1x1xf32, #tpu.memory_space<vmem>>, vector<1x1x1xf32>
    tpu.vector_store %arg3[%c0_17, %c0_18, %c0_19], %38 {strides = array<i32>} : memref<1x1x1xf32, #tpu.memory_space<vmem>>, vector<1x1x1xf32>,
    return
  }
  func.func @transform_0(%arg0: i32) -> (i32, i32) {
    %c0_i32 = arith.constant 0 : i32
    %c0_i32_0 = arith.constant 0 : i32
    return %arg0, %c0_i32 : i32, i32
  }
  func.func @transform_1(%arg0: i32) -> (i32, i32) {
    %c0_i32 = arith.constant 0 : i32
    %c0_i32_0 = arith.constant 0 : i32
    %c0_i32_1 = arith.constant 0 : i32
    return %c0_i32, %c0_i32_0 : i32, i32
  }
  func.func @transform_2(%arg0: i32) -> (i32, i32, i32) {
    %c0_i32 = arith.constant 0 : i32
    %c0_i32_0 = arith.constant 0 : i32
    %c0_i32_1 = arith.constant 0 : i32
    return %arg0, %c0_i32, %c0_i32_0 : i32, i32, i32
  }
  func.func @transform_3(%arg0: i32) -> (i32, i32, i32) {
    %c0_i32 = arith.constant 0 : i32
    %c0_i32_0 = arith.constant 0 : i32
    %c0_i32_1 = arith.constant 0 : i32
    return %arg0, %c0_i32, %c0_i32_0 : i32, i32, i32
  }
  func.func @transform_4(%arg0: i32) -> (i32, i32, i32) {
    %c0_i32 = arith.constant 0 : i32
    %c0_i32_0 = arith.constant 0 : i32
    %c0_i32_1 = arith.constant 0 : i32
    return %arg0, %c0_i32, %c0_i32_0 : i32, i32, i32
  }
}

module attributes {stable_mosaic.version = 11 : i64} {
  func.func @_cl_kernel_resident(%arg0: i32, %arg1: memref<8x32xf32, #tpu.memory_space<vmem>>, %arg2: memref<8x32xf32, #tpu.memory_space<vmem>>, %arg3: memref<1x1x1xf32, #tpu.memory_space<vmem>>, %arg4: memref<1x1x1xf32, #tpu.memory_space<vmem>>, %arg5: memref<1x1x32xf32, #tpu.memory_space<vmem>>) attributes {dimension_semantics = [#tpu.dimension_semantics<parallel>], iteration_bounds = array<i64: 1>, scalar_prefetch = 0 : i64, scratch_operands = 0 : i64, tpu.core_type = #tpu.core_type<tc>, window_params = [{transform_indices = @transform_0, window_bounds = array<i64: 8, 32>}, {pipeline_mode = #tpu.pipeline_mode<synchronous>, transform_indices = @transform_1, window_bounds = array<i64: 8, 32>}, {transform_indices = @transform_2, window_bounds = array<i64: 1, 1, 1>}, {transform_indices = @transform_3, window_bounds = array<i64: 1, 1, 1>}, {transform_indices = @transform_4, window_bounds = array<i64: 1, 1, 32>}]} {
    %c0 = arith.constant 0 : index
    %c0_0 = arith.constant 0 : index
    %0 = vector.load %arg1[%c0, %c0_0] : memref<8x32xf32, #tpu.memory_space<vmem>>, vector<8x32xf32>
    %cst = arith.constant dense<0.000000e+00> : vector<32xf32>
    %1 = vector.multi_reduction <add>, %0, %cst [0] : vector<8x32xf32> to vector<32xf32>
    %2 = vector.shape_cast %1 : vector<32xf32> to vector<1x32xf32>
    %3 = vector.shape_cast %2 : vector<1x32xf32> to vector<1x1x32xf32>
    %c0_1 = arith.constant 0 : index
    %c0_2 = arith.constant 0 : index
    %c0_3 = arith.constant 0 : index
    %4 = vector.load %arg5[%c0_1, %c0_2, %c0_3] : memref<1x1x32xf32, #tpu.memory_space<vmem>>, vector<1x1x32xf32>
    tpu.vector_store %arg5[%c0_1, %c0_2, %c0_3], %3 {strides = array<i32>} : memref<1x1x32xf32, #tpu.memory_space<vmem>>, vector<1x1x32xf32>,
    %5 = arith.mulf %0, %0 : vector<8x32xf32>
    %6 = vector.shape_cast %5 : vector<8x32xf32> to vector<1x8x32xf32>
    %cst_4 = arith.constant dense<0.000000e+00> : vector<1xf32>
    %7 = vector.multi_reduction <add>, %6, %cst_4 [1, 2] : vector<1x8x32xf32> to vector<1xf32>
    %8 = vector.shape_cast %7 : vector<1xf32> to vector<1x1x1xf32>
    %9 = vector.extract %8[0, 0, 0] : f32 from vector<1x1x1xf32>
    %10 = vector.broadcast %9 : f32 to vector<1x1xf32>
    %11 = vector.shape_cast %10 : vector<1x1xf32> to vector<1x1x1xf32>
    %c0_5 = arith.constant 0 : index
    %c0_6 = arith.constant 0 : index
    %c0_7 = arith.constant 0 : index
    %12 = vector.load %arg4[%c0_5, %c0_6, %c0_7] : memref<1x1x1xf32, #tpu.memory_space<vmem>>, vector<1x1x1xf32>
    tpu.vector_store %arg4[%c0_5, %c0_6, %c0_7], %11 {strides = array<i32>} : memref<1x1x1xf32, #tpu.memory_space<vmem>>, vector<1x1x1xf32>,
    %cst_8 = arith.constant 0.104166664 : f32
    %13 = vector.broadcast %cst_8 : f32 to vector<8x32xf32>
    %14 = arith.mulf %0, %13 : vector<8x32xf32>
    %cst_9 = arith.constant 0xFF800000 : f32
    %15 = vector.broadcast %cst_9 : f32 to vector<8x1xf32>
    %cst_10 = arith.constant 0.000000e+00 : f32
    %16 = vector.broadcast %cst_10 : f32 to vector<8x1xf32>
    %c0_11 = arith.constant 0 : index
    %c0_12 = arith.constant 0 : index
    %17 = vector.load %arg2[%c0_11, %c0_12] : memref<8x32xf32, #tpu.memory_space<vmem>>, vector<8x32xf32>
    %cst_13 = arith.constant dense<0.000000e+00> : vector<8x8xf32>
    %18 = tpu.matmul %14, %17, %cst_13 {dimension_numbers = #tpu.dot_dimension_numbers<[1], [1], [0], [0], [0, 0, 1, 0], [], []>} : vector<8x32xf32>, vector<8x32xf32>, vector<8x8xf32> -> vector<8x8xf32>
    %cst_14 = arith.constant dense<0xFF800000> : vector<8xf32>
    %19 = vector.multi_reduction <maximumf>, %18, %cst_14 [1] : vector<8x8xf32> to vector<8xf32>
    %20 = vector.shape_cast %19 : vector<8xf32> to vector<8x1xf32>
    %21 = arith.maximumf %15, %20 : vector<8x1xf32>
    %22 = arith.subf %15, %21 : vector<8x1xf32>
    %23 = math.exp %22 : vector<8x1xf32>
    %24 = arith.mulf %16, %23 : vector<8x1xf32>
    %25 = vector.broadcast %21 : vector<8x1xf32> to vector<8x8xf32>
    %26 = arith.subf %18, %25 : vector<8x8xf32>
    %27 = math.exp %26 : vector<8x8xf32>
    %cst_15 = arith.constant dense<0.000000e+00> : vector<8xf32>
    %28 = vector.multi_reduction <add>, %27, %cst_15 [1] : vector<8x8xf32> to vector<8xf32>
    %29 = vector.shape_cast %28 : vector<8xf32> to vector<8x1xf32>
    %30 = arith.addf %24, %29 : vector<8x1xf32>
    %31 = math.log %30 : vector<8x1xf32>
    %32 = arith.addf %21, %31 : vector<8x1xf32>
    %33 = vector.shape_cast %32 : vector<8x1xf32> to vector<1x8x1xf32>
    %cst_16 = arith.constant dense<0.000000e+00> : vector<1xf32>
    %34 = vector.multi_reduction <add>, %33, %cst_16 [1, 2] : vector<1x8x1xf32> to vector<1xf32>
    %35 = vector.shape_cast %34 : vector<1xf32> to vector<1x1x1xf32>
    %36 = vector.extract %35[0, 0, 0] : f32 from vector<1x1x1xf32>
    %37 = vector.broadcast %36 : f32 to vector<1x1xf32>
    %38 = vector.shape_cast %37 : vector<1x1xf32> to vector<1x1x1xf32>
    %c0_17 = arith.constant 0 : index
    %c0_18 = arith.constant 0 : index
    %c0_19 = arith.constant 0 : index
    %39 = vector.load %arg3[%c0_17, %c0_18, %c0_19] : memref<1x1x1xf32, #tpu.memory_space<vmem>>, vector<1x1x1xf32>
    tpu.vector_store %arg3[%c0_17, %c0_18, %c0_19], %38 {strides = array<i32>} : memref<1x1x1xf32, #tpu.memory_space<vmem>>, vector<1x1x1xf32>,
    return
  }
  func.func @transform_0(%arg0: i32) -> (i32, i32) {
    %c0_i32 = arith.constant 0 : i32
    %c0_i32_0 = arith.constant 0 : i32
    return %arg0, %c0_i32 : i32, i32
  }
  func.func @transform_1(%arg0: i32) -> (i32, i32) {
    %c0_i32 = arith.constant 0 : i32
    %c0_i32_0 = arith.constant 0 : i32
    %c0_i32_1 = arith.constant 0 : i32
    return %c0_i32, %c0_i32_0 : i32, i32
  }
  func.func @transform_2(%arg0: i32) -> (i32, i32, i32) {
    %c0_i32 = arith.constant 0 : i32
    %c0_i32_0 = arith.constant 0 : i32
    %c0_i32_1 = arith.constant 0 : i32
    return %arg0, %c0_i32, %c0_i32_0 : i32, i32, i32
  }
  func.func @transform_3(%arg0: i32) -> (i32, i32, i32) {
    %c0_i32 = arith.constant 0 : i32
    %c0_i32_0 = arith.constant 0 : i32
    %c0_i32_1 = arith.constant 0 : i32
    return %arg0, %c0_i32, %c0_i32_0 : i32, i32, i32
  }
  func.func @transform_4(%arg0: i32) -> (i32, i32, i32) {
    %c0_i32 = arith.constant 0 : i32
    %c0_i32_0 = arith.constant 0 : i32
    %c0_i32_1 = arith.constant 0 : i32
    return %arg0, %c0_i32, %c0_i32_0 : i32, i32, i32
  }
}

</mosaic_0001>

<bundles_post_ra>
// kernel: tpu_custom_call.1
= control target key start
LH: loop header
LB: loop body
LE: loop exit
PB: predicated region body
PF: predicated region fallthrough
CT: control target
= control target key end

     0   :  { %10 = vsyncpa [#allocation3], 0  ;;  %s404_s0 = inlined_call_operand.hbm [shape: f32[8,32], index: 0, kind: input, shape index: {}]   ;;  %s405_s1 = inlined_call_operand.hbm [shape: f32[8,32], index: 1, kind: input, shape index: {}]   ;;  %s406_s2 = inlined_call_operand.hbm [shape: f32[1,1,1], index: 2, kind: output, shape index: {0}]   ;;  %s407_s3 = inlined_call_operand.hbm [shape: f32[1,1,1], index: 3, kind: output, shape index: {1}]   ;;  %s408_s4 = inlined_call_operand.hbm [shape: f32[1,1,32], index: 4, kind: output, shape index: {2}]  }
   0x1   :  { %11 = vsyncpa [#allocation6], 0 }
   0x2   :  { %12 = vsyncpa [#allocation4], 0 }
   0x3   :  { %13 = vsyncpa [#allocation9], 0  ;;  %s351_s15 = smov [#allocation2]   ;;  %s352_s17 = smov [#allocation5]  }
   0x4   :  { %s20_s16 = sshll.u32 %s351_s15, 4  ;;  %s30_s18 = sshll.u32 %s352_s17, 4  ;;  %s21_s16 = int_to_ptr.vmem [resolvable:$true] %s20_s16  ;;  %s31_s18 = int_to_ptr.vmem [resolvable:$true] %s30_s18 }
   0x5   :  { %s251_s19 = scalar_lea.vmem %s21_s16, 128  ;;  %p256_p1 = scmp.lt.s32.totalorder %s21_s16, %s21_s16 }
   0x6   :  { %p252_p0 = scmp.ne.s32.totalorder %s21_s16, %s251_s19  ;;  %p257_p2 = scmp.lt.s32.totalorder %s251_s19, %s251_s19 }
   0x8   :  { %p258_p3 = por %p257_p2, %p256_p1 }
   0xa   :  { %p259_p4 = pnand %p258_p3, %p252_p0 }
   0xc   :  { %262 = shalt.err (!%p259_p4)
}
   0xd   :  { %23 = dma.hbm_to_vmem [thread:$0]  %s404_s0, 128, %s21_s16, [#allocation3]  }
   0xe   :  { %s271_s22 = scalar_lea.vmem %s31_s18, 128  ;;  %p276_p6 = scmp.lt.s32.totalorder %s31_s18, %s31_s18 }
   0xf   :  { %p272_p5 = scmp.ne.s32.totalorder %s31_s18, %s271_s22  ;;  %p277_p7 = scmp.lt.s32.totalorder %s271_s22, %s271_s22 }
  0x11   :  { %p278_p8 = por %p277_p7, %p276_p6 }
  0x13   :  { %p279_p9 = pnand %p278_p8, %p272_p5 }
  0x15   :  { %282 = shalt.err (!%p279_p9)
}
  0x16   :  { %33 = dma.hbm_to_vmem [thread:$0]  %s405_s1, 128, %s31_s18, [#allocation6]  }
  0x17   :  { %343 = dma.done.wait [#allocation3], 128  }
  0x18   :  { %344 = vsyncadd [#allocation3], 4294967168 }
  0x19   :  { %345 = dma.done.wait [#allocation6], 128  }
  0x1a   :  { %346 = vsyncadd [#allocation6], 4294967168  ;;  %v353_v0 = vmov 0.0   ;;  %vm354_vm0 = vmmov 0   ;;  %vm41_vm1 = vcmask 261120   ;;  %v40_v1 = vld [vmem:[#allocation2] sm:$0xff] }
  0x1b   :  { %221 = vmatprep.subr.mxu0 %v353_v0  ;;  %223 = vmatprep.mubr.msk.f32.mxu0 %vm354_vm0, %v353_v0  ;;  %v66_v2 = vld [vmem:[#allocation5] sm:$0xff]  ;;  %v65_v3 = vmul.f32 0.104166664, %v40_v1  ;;  %vm143_vm2 = vcmask 64512   ;;  %v51_v12 = vmul.f32 %v40_v1, %v40_v1  ;;  %vm161_vm3 = vcmask 7168   ;;  %s355_s1 = smov [#allocation8]  }
  0x1c   :  { %222 = vmatpush3.xpose.msk.msra.mxu0 %vm41_vm1, %v66_v2  ;;  %v42_v31 = vsel %vm41_vm1, %v40_v1, 0.0  ;;  %vm63_vm4 = vcmask 0   ;;  %s190_s25 = sshll.u32 %s355_s1, 4  ;;  %vm49_vm5 = vcmask 253952   ;;  %s191_s25 = int_to_ptr.vmem [resolvable:$true] %s190_s25 }
  0x1d   :  { %v52_v13 = vsel %vm41_vm1, %v51_v12, 0.0  ;;  %v43_v32 = vrot.slane %v42_v31, 4  ;;  %s283_s26 = scalar_lea.vmem %s191_s25, 16  ;;  %s287_s27 = scalar_lea.vmem %s191_s25, 32 }
  0x1e   :  { %53 = vadd.xlane.f32.xlu1 %v52_v13  ;;  %p284_p10 = scmp.ne.s32.totalorder %s191_s25, %s283_s26  ;;  %p288_p11 = scmp.lt.s32.totalorder %s191_s25, %s191_s25 }
  0x1f   :  { %224 = vmatmul.mubr.msk.f32.vlgmr.msra.gmra.mxu0 %vm41_vm1, %v65_v3  ;;  %v44_v33 = vadd.f32 %v43_v32, %v42_v31  ;;  %p289_p12 = scmp.lt.s32.totalorder %s287_s27, %s283_s26 }
  0x21   :  { %v45_v35 = vrot.slane %v44_v33, 2  ;;  %p290_p13 = por %p289_p12, %p288_p11 }
  0x23   :  { %v46_v36 = vadd.f32 %v45_v35, %v44_v33  ;;  %p291_p0 = pnand %p290_p13, %p284_p10 }
  0x25   :  { %v47_v37 = vrot.slane %v46_v36, 1 }
  0x27   :  { %v48_v38 = vadd.f32 %v47_v37, %v46_v36 }
  0xa7   :  { %v54_v20 = vpop.xlane.xlu1 %53 }
  0xa8   :  { %v55_v22 = vrot.slane %v54_v20, 4 }
  0xaa   :  { %v56_v25 = vadd.f32 %v55_v22, %v54_v20 }
  0xac   :  { %v57_v27 = vrot.slane %v56_v25, 2 }
  0xae   :  { %v58_v28 = vadd.f32 %v57_v27, %v56_v25 }
  0xb0   :  { %v59_v29 = vrot.slane %v58_v28, 1 }
  0xb2   :  { %v60_v30 = vadd.f32 %v59_v29, %v58_v28 }
  0xb4   :  { %226 = vpush %v60_v30 }
  0xdf   :  { %v139_v4 = vpop.f32.mrf.mxu0 }
  0xe0   :  { %v144_v5 = vsel %vm143_vm2, %v139_v4, -inf }
  0xe1   :  { %145 = vmax.xlane.f32.xlu0 %v144_v5  ;;  %v225_v6 = vpop.f32.mrf.mxu0 }
  0xe5   :  { %s227_s0 = spop %226 }
  0xe6   :  { %v62_v34 = vstv %s227_s0 }
  0xe7   :  { %64 = vst.msk [vmem:[#allocation8] sm:$0x1] %vm63_vm4, %v62_v34 }
 0x16a   :  { %v146_v7 = vpop.xlane.xlu0 %145 }
 0x16b   :  { %v151_v8 = vsub.f32 %v139_v4, %v146_v7  ;;  %v147_v14 = vsub.f32 -inf, %v146_v7 }
 0x16d   :  { %v152_v9 = vmul.f32 1.442695, %v151_v8  ;;  %v148_v15 = vmul.f32 1.442695, %v147_v14 }
 0x16f   :  { %237 = vpow2.f32 %v152_v9 }
 0x170   :  { %239 = vpow2.f32 %v148_v15 }
 0x17c   :  { %v238_v10 = vpop.eup %237 }
 0x17d   :  { %v154_v11 = vsel %vm143_vm2, %v238_v10, 0.0  ;;  %v240_v16 = vpop.eup %239 }
 0x17e   :  { %155 = vadd.xlane.f32.xlu0 %v154_v11  ;;  %v150_v17 = vmul.f32 0.0, %v240_v16 }
 0x207   :  { %v156_v18 = vpop.xlane.xlu0 %155 }
 0x208   :  { %v157_v19 = vadd.f32 %v156_v18, %v150_v17 }
 0x20a   :  { %241 = vlog2.f32 %v157_v19 }
 0x217   :  { %v242_v21 = vpop.eup %241 }
 0x218   :  { %v159_v23 = vmul.f32 0.6931472, %v242_v21 }
 0x21a   :  { %v160_v24 = vadd.f32 %v159_v23, %v146_v7 }
 0x21c   :  { %v162_v26 = vsel %vm161_vm3, %v160_v24, 0.0 }
 0x21d   :  { %163 = vadd.xlane.f32.xlu1 %v162_v26 }
 0x21e   :  { %294 = shalt.err (!%p291_p0)
}
 0x21f   :  { %193 = dma.vmem_to_hbm [thread:$0]  %s191_s25, 16, %s407_s3, [#allocation9]   ;;  %50 = vst.msk [vmem:[#allocation10] sm:$0x1] %vm49_vm5, %v48_v38 }
 0x220   :  { %s356_s30 = smov [#allocation10]  }
 0x221   :  { %s200_s5 = sshll.u32 %s356_s30, 4  ;;  %s201_s5 = int_to_ptr.vmem [resolvable:$true] %s200_s5 }
 0x222   :  { %s303_s6 = scalar_lea.vmem %s201_s5, 16  ;;  %s307_s7 = scalar_lea.vmem %s201_s5, 32 }
 0x223   :  { %p304_p1 = scmp.ne.s32.totalorder %s201_s5, %s303_s6  ;;  %p308_p2 = scmp.lt.s32.totalorder %s201_s5, %s201_s5 }
 0x224   :  { %p309_p3 = scmp.lt.s32.totalorder %s307_s7, %s303_s6 }
 0x226   :  { %p310_p4 = por %p309_p3, %p308_p2 }
 0x228   :  { %p311_p5 = pnand %p310_p4, %p304_p1 }
 0x22a   :  { %314 = shalt.err (!%p311_p5)
}
 0x22b   :  { %203 = dma.vmem_to_hbm [thread:$0]  %s201_s5, 16, %s408_s4, [#allocation9]  }
 0x22c   :  { %s357_s3 = smov [#allocation7]  }
 0x22d   :  { %s180_s10 = sshll.u32 %s357_s3, 4  ;;  %s181_s10 = int_to_ptr.vmem [resolvable:$true] %s180_s10 }
 0x22e   :  { %s323_s12 = scalar_lea.vmem %s181_s10, 16  ;;  %s327_s13 = scalar_lea.vmem %s181_s10, 32 }
 0x22f   :  { %p324_p6 = scmp.ne.s32.totalorder %s181_s10, %s323_s12  ;;  %p328_p7 = scmp.lt.s32.totalorder %s181_s10, %s181_s10 }
 0x230   :  { %p329_p8 = scmp.lt.s32.totalorder %s327_s13, %s323_s12 }
 0x232   :  { %p330_p9 = por %p329_p8, %p328_p7 }
 0x234   :  { %p331_p10 = pnand %p330_p9, %p324_p6 }
 0x2a6   :  { %v164_v39 = vpop.xlane.xlu1 %163 }
 0x2a7   :  { %v165_v40 = vrot.slane %v164_v39, 4 }
 0x2a9   :  { %v166_v41 = vadd.f32 %v165_v40, %v164_v39 }
 0x2ab   :  { %v167_v42 = vrot.slane %v166_v41, 2 }
 0x2ad   :  { %v168_v43 = vadd.f32 %v167_v42, %v166_v41 }
 0x2af   :  { %v169_v44 = vrot.slane %v168_v43, 1 }
 0x2b1   :  { %v170_v45 = vadd.f32 %v169_v44, %v168_v43 }
 0x2b3   :  { %228 = vpush %v170_v45 }
 0x2e4   :  { %s229_s11 = spop %228 }
 0x2e5   :  { %v172_v46 = vstv %s229_s11 }
 0x2e6   :  { %173 = vst.msk [vmem:[#allocation7] sm:$0x1] %vm63_vm4, %v172_v46 }
 0x2e7   :  { %334 = shalt.err (!%p331_p10)
}
 0x2e8   :  { %183 = dma.vmem_to_hbm [thread:$0]  %s181_s10, 16, %s406_s2, [#allocation4]  }
 0x2e9   :  { %347 = dma.done.wait [#allocation4], 16  }
 0x2ea   :  { %348 = vsyncadd [#allocation4], 4294967280 }
 0x2eb   :  { %349 = dma.done.wait [#allocation9], 32  }
 0x2ec   :  { %350 = vsyncadd [#allocation9], 4294967264 }
 0x2ed   :  { %213 = vsyncpa [#allocation3], 1 }
 0x2ee   :  { %214 = vsyncpa [#allocation6], 1 }
 0x2ef   :  { %215 = vsyncpa [#allocation4], 1 }
 0x2f0   :  { %216 = vsyncpa [#allocation9], 1 }

// kernel: tpu_custom_call.1
= control target key start
LH: loop header
LB: loop body
LE: loop exit
PB: predicated region body
PF: predicated region fallthrough
CT: control target
= control target key end

     0   :  { %10 = vsyncpa [#allocation3], 0  ;;  %s404_s0 = inlined_call_operand.hbm [shape: f32[8,32], index: 0, kind: input, shape index: {}]   ;;  %s405_s1 = inlined_call_operand.hbm [shape: f32[8,32], index: 1, kind: input, shape index: {}]   ;;  %s406_s2 = inlined_call_operand.hbm [shape: f32[1,1,1], index: 2, kind: output, shape index: {0}]   ;;  %s407_s3 = inlined_call_operand.hbm [shape: f32[1,1,1], index: 3, kind: output, shape index: {1}]   ;;  %s408_s4 = inlined_call_operand.hbm [shape: f32[1,1,32], index: 4, kind: output, shape index: {2}]  }
   0x1   :  { %11 = vsyncpa [#allocation6], 0 }
   0x2   :  { %12 = vsyncpa [#allocation4], 0 }
   0x3   :  { %13 = vsyncpa [#allocation9], 0  ;;  %s351_s15 = smov [#allocation2]   ;;  %s352_s17 = smov [#allocation5]  }
   0x4   :  { %s20_s16 = sshll.u32 %s351_s15, 4  ;;  %s30_s18 = sshll.u32 %s352_s17, 4  ;;  %s21_s16 = int_to_ptr.vmem [resolvable:$true] %s20_s16  ;;  %s31_s18 = int_to_ptr.vmem [resolvable:$true] %s30_s18 }
   0x5   :  { %s251_s19 = scalar_lea.vmem %s21_s16, 128  ;;  %p256_p1 = scmp.lt.s32.totalorder %s21_s16, %s21_s16 }
   0x6   :  { %p252_p0 = scmp.ne.s32.totalorder %s21_s16, %s251_s19  ;;  %p257_p2 = scmp.lt.s32.totalorder %s251_s19, %s251_s19 }
   0x8   :  { %p258_p3 = por %p257_p2, %p256_p1 }
   0xa   :  { %p259_p4 = pnand %p258_p3, %p252_p0 }
   0xc   :  { %262 = shalt.err (!%p259_p4)
}
   0xd   :  { %23 = dma.hbm_to_vmem [thread:$0]  %s404_s0, 128, %s21_s16, [#allocation3]  }
   0xe   :  { %s271_s22 = scalar_lea.vmem %s31_s18, 128  ;;  %p276_p6 = scmp.lt.s32.totalorder %s31_s18, %s31_s18 }
   0xf   :  { %p272_p5 = scmp.ne.s32.totalorder %s31_s18, %s271_s22  ;;  %p277_p7 = scmp.lt.s32.totalorder %s271_s22, %s271_s22 }
  0x11   :  { %p278_p8 = por %p277_p7, %p276_p6 }
  0x13   :  { %p279_p9 = pnand %p278_p8, %p272_p5 }
  0x15   :  { %282 = shalt.err (!%p279_p9)
}
  0x16   :  { %33 = dma.hbm_to_vmem [thread:$0]  %s405_s1, 128, %s31_s18, [#allocation6]  }
  0x17   :  { %343 = dma.done.wait [#allocation3], 128  }
  0x18   :  { %344 = vsyncadd [#allocation3], 4294967168 }
  0x19   :  { %345 = dma.done.wait [#allocation6], 128  }
  0x1a   :  { %346 = vsyncadd [#allocation6], 4294967168  ;;  %v353_v0 = vmov 0.0   ;;  %vm354_vm0 = vmmov 0   ;;  %vm41_vm1 = vcmask 261120   ;;  %v40_v1 = vld [vmem:[#allocation2] sm:$0xff] }
  0x1b   :  { %221 = vmatprep.subr.mxu0 %v353_v0  ;;  %223 = vmatprep.mubr.msk.f32.mxu0 %vm354_vm0, %v353_v0  ;;  %v66_v2 = vld [vmem:[#allocation5] sm:$0xff]  ;;  %v65_v3 = vmul.f32 0.104166664, %v40_v1  ;;  %vm143_vm2 = vcmask 64512   ;;  %v51_v12 = vmul.f32 %v40_v1, %v40_v1  ;;  %vm161_vm3 = vcmask 7168   ;;  %s355_s1 = smov [#allocation8]  }
  0x1c   :  { %222 = vmatpush3.xpose.msk.msra.mxu0 %vm41_vm1, %v66_v2  ;;  %v42_v31 = vsel %vm41_vm1, %v40_v1, 0.0  ;;  %vm63_vm4 = vcmask 0   ;;  %s190_s25 = sshll.u32 %s355_s1, 4  ;;  %vm49_vm5 = vcmask 253952   ;;  %s191_s25 = int_to_ptr.vmem [resolvable:$true] %s190_s25 }
  0x1d   :  { %v52_v13 = vsel %vm41_vm1, %v51_v12, 0.0  ;;  %v43_v32 = vrot.slane %v42_v31, 4  ;;  %s283_s26 = scalar_lea.vmem %s191_s25, 16  ;;  %s287_s27 = scalar_lea.vmem %s191_s25, 32 }
  0x1e   :  { %53 = vadd.xlane.f32.xlu1 %v52_v13  ;;  %p284_p10 = scmp.ne.s32.totalorder %s191_s25, %s283_s26  ;;  %p288_p11 = scmp.lt.s32.totalorder %s191_s25, %s191_s25 }
  0x1f   :  { %224 = vmatmul.mubr.msk.f32.vlgmr.msra.gmra.mxu0 %vm41_vm1, %v65_v3  ;;  %v44_v33 = vadd.f32 %v43_v32, %v42_v31  ;;  %p289_p12 = scmp.lt.s32.totalorder %s287_s27, %s283_s26 }
  0x21   :  { %v45_v35 = vrot.slane %v44_v33, 2  ;;  %p290_p13 = por %p289_p12, %p288_p11 }
  0x23   :  { %v46_v36 = vadd.f32 %v45_v35, %v44_v33  ;;  %p291_p0 = pnand %p290_p13, %p284_p10 }
  0x25   :  { %v47_v37 = vrot.slane %v46_v36, 1 }
  0x27   :  { %v48_v38 = vadd.f32 %v47_v37, %v46_v36 }
  0xa7   :  { %v54_v20 = vpop.xlane.xlu1 %53 }
  0xa8   :  { %v55_v22 = vrot.slane %v54_v20, 4 }
  0xaa   :  { %v56_v25 = vadd.f32 %v55_v22, %v54_v20 }
  0xac   :  { %v57_v27 = vrot.slane %v56_v25, 2 }
  0xae   :  { %v58_v28 = vadd.f32 %v57_v27, %v56_v25 }
  0xb0   :  { %v59_v29 = vrot.slane %v58_v28, 1 }
  0xb2   :  { %v60_v30 = vadd.f32 %v59_v29, %v58_v28 }
  0xb4   :  { %226 = vpush %v60_v30 }
  0xdf   :  { %v139_v4 = vpop.f32.mrf.mxu0 }
  0xe0   :  { %v144_v5 = vsel %vm143_vm2, %v139_v4, -inf }
  0xe1   :  { %145 = vmax.xlane.f32.xlu0 %v144_v5  ;;  %v225_v6 = vpop.f32.mrf.mxu0 }
  0xe5   :  { %s227_s0 = spop %226 }
  0xe6   :  { %v62_v34 = vstv %s227_s0 }
  0xe7   :  { %64 = vst.msk [vmem:[#allocation8] sm:$0x1] %vm63_vm4, %v62_v34 }
 0x16a   :  { %v146_v7 = vpop.xlane.xlu0 %145 }
 0x16b   :  { %v151_v8 = vsub.f32 %v139_v4, %v146_v7  ;;  %v147_v14 = vsub.f32 -inf, %v146_v7 }
 0x16d   :  { %v152_v9 = vmul.f32 1.442695, %v151_v8  ;;  %v148_v15 = vmul.f32 1.442695, %v147_v14 }
 0x16f   :  { %237 = vpow2.f32 %v152_v9 }
 0x170   :  { %239 = vpow2.f32 %v148_v15 }
 0x17c   :  { %v238_v10 = vpop.eup %237 }
 0x17d   :  { %v154_v11 = vsel %vm143_vm2, %v238_v10, 0.0  ;;  %v240_v16 = vpop.eup %239 }
 0x17e   :  { %155 = vadd.xlane.f32.xlu0 %v154_v11  ;;  %v150_v17 = vmul.f32 0.0, %v240_v16 }
 0x207   :  { %v156_v18 = vpop.xlane.xlu0 %155 }
 0x208   :  { %v157_v19 = vadd.f32 %v156_v18, %v150_v17 }
 0x20a   :  { %241 = vlog2.f32 %v157_v19 }
 0x217   :  { %v242_v21 = vpop.eup %241 }
 0x218   :  { %v159_v23 = vmul.f32 0.6931472, %v242_v21 }
 0x21a   :  { %v160_v24 = vadd.f32 %v159_v23, %v146_v7 }
 0x21c   :  { %v162_v26 = vsel %vm161_vm3, %v160_v24, 0.0 }
 0x21d   :  { %163 = vadd.xlane.f32.xlu1 %v162_v26 }
 0x21e   :  { %294 = shalt.err (!%p291_p0)
}
 0x21f   :  { %193 = dma.vmem_to_hbm [thread:$0]  %s191_s25, 16, %s407_s3, [#allocation9]   ;;  %50 = vst.msk [vmem:[#allocation10] sm:$0x1] %vm49_vm5, %v48_v38 }
 0x220   :  { %s356_s30 = smov [#allocation10]  }
 0x221   :  { %s200_s5 = sshll.u32 %s356_s30, 4  ;;  %s201_s5 = int_to_ptr.vmem [resolvable:$true] %s200_s5 }
 0x222   :  { %s303_s6 = scalar_lea.vmem %s201_s5, 16  ;;  %s307_s7 = scalar_lea.vmem %s201_s5, 32 }
 0x223   :  { %p304_p1 = scmp.ne.s32.totalorder %s201_s5, %s303_s6  ;;  %p308_p2 = scmp.lt.s32.totalorder %s201_s5, %s201_s5 }
 0x224   :  { %p309_p3 = scmp.lt.s32.totalorder %s307_s7, %s303_s6 }
 0x226   :  { %p310_p4 = por %p309_p3, %p308_p2 }
 0x228   :  { %p311_p5 = pnand %p310_p4, %p304_p1 }
 0x22a   :  { %314 = shalt.err (!%p311_p5)
}
 0x22b   :  { %203 = dma.vmem_to_hbm [thread:$0]  %s201_s5, 16, %s408_s4, [#allocation9]  }
 0x22c   :  { %s357_s3 = smov [#allocation7]  }
 0x22d   :  { %s180_s10 = sshll.u32 %s357_s3, 4  ;;  %s181_s10 = int_to_ptr.vmem [resolvable:$true] %s180_s10 }
 0x22e   :  { %s323_s12 = scalar_lea.vmem %s181_s10, 16  ;;  %s327_s13 = scalar_lea.vmem %s181_s10, 32 }
 0x22f   :  { %p324_p6 = scmp.ne.s32.totalorder %s181_s10, %s323_s12  ;;  %p328_p7 = scmp.lt.s32.totalorder %s181_s10, %s181_s10 }
 0x230   :  { %p329_p8 = scmp.lt.s32.totalorder %s327_s13, %s323_s12 }
 0x232   :  { %p330_p9 = por %p329_p8, %p328_p7 }
 0x234   :  { %p331_p10 = pnand %p330_p9, %p324_p6 }
 0x2a6   :  { %v164_v39 = vpop.xlane.xlu1 %163 }
 0x2a7   :  { %v165_v40 = vrot.slane %v164_v39, 4 }
 0x2a9   :  { %v166_v41 = vadd.f32 %v165_v40, %v164_v39 }
 0x2ab   :  { %v167_v42 = vrot.slane %v166_v41, 2 }
 0x2ad   :  { %v168_v43 = vadd.f32 %v167_v42, %v166_v41 }
 0x2af   :  { %v169_v44 = vrot.slane %v168_v43, 1 }
 0x2b1   :  { %v170_v45 = vadd.f32 %v169_v44, %v168_v43 }
 0x2b3   :  { %228 = vpush %v170_v45 }
 0x2e4   :  { %s229_s11 = spop %228 }
 0x2e5   :  { %v172_v46 = vstv %s229_s11 }
 0x2e6   :  { %173 = vst.msk [vmem:[#allocation7] sm:$0x1] %vm63_vm4, %v172_v46 }
 0x2e7   :  { %334 = shalt.err (!%p331_p10)
}
 0x2e8   :  { %183 = dma.vmem_to_hbm [thread:$0]  %s181_s10, 16, %s406_s2, [#allocation4]  }
 0x2e9   :  { %347 = dma.done.wait [#allocation4], 16  }
 0x2ea   :  { %348 = vsyncadd [#allocation4], 4294967280 }
 0x2eb   :  { %349 = dma.done.wait [#allocation9], 32  }
 0x2ec   :  { %350 = vsyncadd [#allocation9], 4294967264 }
 0x2ed   :  { %213 = vsyncpa [#allocation3], 1 }
 0x2ee   :  { %214 = vsyncpa [#allocation6], 1 }
 0x2ef   :  { %215 = vsyncpa [#allocation4], 1 }
 0x2f0   :  { %216 = vsyncpa [#allocation9], 1 }

</bundles_post_ra>
